<compile_context>
chip_gen: v5e
topology: v5e:2x2
jax: 0.10.0
libtpu: 0.0.40
codegen_flags: <defaults>
</compile_context>

<pallas_src>
import jax
import jax.numpy as jnp
from jax.experimental import pallas as pl
from jax.experimental.pallas import tpu as pltpu


HIDDEN = 128
EMBED = 64

_TB_TARGET = 1024          # batch-tile rows (sweep 512-2048 if batch is huge)
_OBS_TILE_BYTES = 2 << 20  # cap obs tile so 2x double-buffer + weights fit v7x scoped VMEM


def _round_up(x, m):
    return (x + m - 1) // m * m


def _mlp_kernel(x_ref, w1_ref, b1_ref, w2_ref, b2_ref, o_ref):
    """Fused Linear->ReLU->Linear->ReLU on one packed batch tile.

    x_ref:  (TB/2, 2n)    two obs rows packed per kernel row
    w1_ref: (2n, 256)     block-diag(w1, w1)       b1_ref: (1, 256)
    w2_ref: (256, 128)    block-diag(w2, w2)       b2_ref: (1, 128)
    o_ref:  (TB/2, 128)   lane-dense packed output (two embed rows per row)
    """
    h = jnp.dot(x_ref[...], w1_ref[...], preferred_element_type=jnp.float32)
    h = jnp.maximum(h + b1_ref[...], 0.0)
    o = jnp.dot(h, w2_ref[...], preferred_element_type=jnp.float32)
    o = jnp.maximum(o + b2_ref[...], 0.0)
    o_ref[...] = o.astype(o_ref.dtype)


def _pack_params(w1, b1, w2, b2):
    """Build block-diagonal weights so two batch rows ride one 128-lane row."""
    n = w1.shape[0]
    w1_pk = jnp.zeros((2 * n, 2 * HIDDEN), jnp.float32)
    w1_pk = w1_pk.at[:n, :HIDDEN].set(w1).at[n:, HIDDEN:].set(w1)
    b1_pk = jnp.concatenate([b1, b1]).reshape(1, 2 * HIDDEN)
    w2_pk = jnp.zeros((2 * HIDDEN, 2 * EMBED), jnp.float32)
    w2_pk = w2_pk.at[:HIDDEN, :EMBED].set(w2).at[HIDDEN:, EMBED:].set(w2)
    b2_pk = jnp.concatenate([b2, b2]).reshape(1, 2 * EMBED)
    return w1_pk, b1_pk, w2_pk, b2_pk


@jax.jit
def zones_env_model_forward(obs, w1, b1, w2, b2):
    """obs: (B, n) f32 -> (B, 64) f32, fused 2-layer MLP in one Pallas kernel."""
    B, n = obs.shape
    assert w1.shape == (n, HIDDEN) and b1.shape == (HIDDEN,)
    assert w2.shape == (HIDDEN, EMBED) and b2.shape == (EMBED,)

    # ---- batch tile sizing (multiple of 16 so packed rows stay 8-aligned) ----
    tb_cap = max(16, (_OBS_TILE_BYTES // max(4 * n, 1)) // 16 * 16)
    tb = min(_TB_TARGET, tb_cap)
    if B <= tb:
        tb = max(16, _round_up(B, 16))
    b_pad = _round_up(B, tb)

    obs_p = obs if b_pad == B else jnp.pad(obs, ((0, b_pad - B), (0, 0)))
    # Free row-major view: pack two consecutive batch rows per kernel row.
    obs_pk = obs_p.reshape(b_pad // 2, 2 * n)
    w1_pk, b1_pk, w2_pk, b2_pk = _pack_params(w1, b1, w2, b2)

    rows = tb // 2                      # packed rows per batch tile
    n2, h2, e2 = 2 * n, 2 * HIDDEN, 2 * EMBED
    grid = (b_pad // tb,)

    flops = 2 * (b_pad // 2) * (n2 * h2 + h2 * e2)
    bytes_accessed = 4 * (b_pad * n + b_pad * EMBED
                          + n2 * h2 + h2 + h2 * e2 + e2)

    out_pk = pl.pallas_call(
        _mlp_kernel,
        out_shape=jax.ShapeDtypeStruct((b_pad // 2, e2), jnp.float32),
        grid=grid,
        in_specs=[
            pl.BlockSpec((rows, n2), lambda i: (i, 0)),   # obs tile (streamed/pipelined)
            pl.BlockSpec((n2, h2), lambda i: (0, 0)),     # weights stay VMEM-resident
            pl.BlockSpec((1, h2), lambda i: (0, 0)),
            pl.BlockSpec((h2, e2), lambda i: (0, 0)),
            pl.BlockSpec((1, e2), lambda i: (0, 0)),
        ],
        out_specs=pl.BlockSpec((rows, e2), lambda i: (i, 0)),  # 128-lane-dense stores
        compiler_params=pltpu.CompilerParams(
            dimension_semantics=("parallel",)),
        cost_estimate=pl.CostEstimate(
            flops=flops, transcendentals=0, bytes_accessed=bytes_accessed),
    )(obs_pk, w1_pk, b1_pk, w2_pk, b2_pk)

    # Unpack (free row-major view) and drop padded rows.
    return out_pk.reshape(b_pad, EMBED)[:B]


def init_params(key, n):
    """Deterministic init matching nn.Linear shapes (stored as (in, out))."""
    k1, k2, k3, k4 = jax.random.split(key, 4)
    bound1 = 1.0 / jnp.sqrt(n)
    bound2 = 1.0 / jnp.sqrt(HIDDEN)
    w1 = jax.random.uniform(k1, (n, HIDDEN), jnp.float32, -bound1, bound1)
    b1 = jax.random.uniform(k2, (HIDDEN,), jnp.float32, -bound1, bound1)
    w2 = jax.random.uniform(k3, (HIDDEN, EMBED), jnp.float32, -bound2, bound2)
    b2 = jax.random.uniform(k4, (EMBED,), jnp.float32, -bound2, bound2)
    return w1, b1, w2, b2


def _reference(obs, w1, b1, w2, b2):
    return jnp.maximum(jnp.maximum(obs @ w1 + b1, 0.0) @ w2 + b2, 0.0)


if __name__ == "__main__":
    key = jax.random.PRNGKey(0)
    k_obs, k_obs2, k_params = jax.random.split(key, 3)

    n = 32
    w1, b1, w2, b2 = init_params(k_params, n)

    # Primary small case.
    obs = jax.random.normal(k_obs, (8, n), dtype=jnp.float32)
    out = jax.block_until_ready(zones_env_model_forward(obs, w1, b1, w2, b2))
    ref = _reference(obs, w1, b1, w2, b2)
    assert out.shape == (8, EMBED)
    assert jnp.allclose(out, ref, atol=1e-4, rtol=1e-4)

    # Exercise the padded / non-multiple-of-16 batch path.
    obs2 = jax.random.normal(k_obs2, (40, n), dtype=jnp.float32)
    out2 = jax.block_until_ready(zones_env_model_forward(obs2, w1, b1, w2, b2))
    ref2 = _reference(obs2, w1, b1, w2, b2)
    assert out2.shape == (40, EMBED)
    assert jnp.allclose(out2, ref2, atol=1e-4, rtol=1e-4)

    print("KERNEL_OK")
</pallas_src>

<mosaic_0001>
module attributes {stable_mosaic.version = 11 : i64} {
  func.func @_mlp_kernel(%arg0: i32, %arg1: memref<8x64xf32, #tpu.memory_space<vmem>>, %arg2: memref<64x256xf32, #tpu.memory_space<vmem>>, %arg3: memref<1x256xf32, #tpu.memory_space<vmem>>, %arg4: memref<256x128xf32, #tpu.memory_space<vmem>>, %arg5: memref<1x128xf32, #tpu.memory_space<vmem>>, %arg6: memref<8x128xf32, #tpu.memory_space<vmem>>) attributes {dimension_semantics = [#tpu.dimension_semantics<parallel>], iteration_bounds = array<i64: 1>, scalar_prefetch = 0 : i64, scratch_operands = 0 : i64, tpu.core_type = #tpu.core_type<tc>, window_params = [{transform_indices = @transform_0, window_bounds = array<i64: 8, 64>}, {pipeline_mode = #tpu.pipeline_mode<synchronous>, transform_indices = @transform_1, window_bounds = array<i64: 64, 256>}, {pipeline_mode = #tpu.pipeline_mode<synchronous>, transform_indices = @transform_2, window_bounds = array<i64: 1, 256>}, {pipeline_mode = #tpu.pipeline_mode<synchronous>, transform_indices = @transform_3, window_bounds = array<i64: 256, 128>}, {pipeline_mode = #tpu.pipeline_mode<synchronous>, transform_indices = @transform_4, window_bounds = array<i64: 1, 128>}, {transform_indices = @transform_5, window_bounds = array<i64: 8, 128>}]} {
    %c0 = arith.constant 0 : index
    %c0_0 = arith.constant 0 : index
    %0 = vector.load %arg1[%c0, %c0_0] : memref<8x64xf32, #tpu.memory_space<vmem>>, vector<8x64xf32>
    %c0_1 = arith.constant 0 : index
    %c0_2 = arith.constant 0 : index
    %1 = vector.load %arg2[%c0_1, %c0_2] : memref<64x256xf32, #tpu.memory_space<vmem>>, vector<64x256xf32>
    %cst = arith.constant dense<0.000000e+00> : vector<8x256xf32>
    %2 = tpu.matmul %0, %1, %cst {dimension_numbers = #tpu.dot_dimension_numbers<[1], [0], [0], [1], [0, 0, 1, 1], [], []>} : vector<8x64xf32>, vector<64x256xf32>, vector<8x256xf32> -> vector<8x256xf32>
    %c0_3 = arith.constant 0 : index
    %c0_4 = arith.constant 0 : index
    %3 = vector.load %arg3[%c0_3, %c0_4] : memref<1x256xf32, #tpu.memory_space<vmem>>, vector<1x256xf32>
    %4 = vector.broadcast %3 : vector<1x256xf32> to vector<8x256xf32>
    %5 = arith.addf %2, %4 : vector<8x256xf32>
    %cst_5 = arith.constant 0.000000e+00 : f32
    %6 = vector.broadcast %cst_5 : f32 to vector<8x256xf32>
    %7 = arith.maximumf %5, %6 : vector<8x256xf32>
    %c0_6 = arith.constant 0 : index
    %c0_7 = arith.constant 0 : index
    %8 = vector.load %arg4[%c0_6, %c0_7] : memref<256x128xf32, #tpu.memory_space<vmem>>, vector<256x128xf32>
    %cst_8 = arith.constant dense<0.000000e+00> : vector<8x128xf32>
    %9 = tpu.matmul %7, %8, %cst_8 {dimension_numbers = #tpu.dot_dimension_numbers<[1], [0], [0], [1], [0, 0, 1, 1], [], []>} : vector<8x256xf32>, vector<256x128xf32>, vector<8x128xf32> -> vector<8x128xf32>
    %c0_9 = arith.constant 0 : index
    %c0_10 = arith.constant 0 : index
    %10 = vector.load %arg5[%c0_9, %c0_10] : memref<1x128xf32, #tpu.memory_space<vmem>>, vector<1x128xf32>
    %11 = vector.broadcast %10 : vector<1x128xf32> to vector<8x128xf32>
    %12 = arith.addf %9, %11 : vector<8x128xf32>
    %cst_11 = arith.constant 0.000000e+00 : f32
    %13 = vector.broadcast %cst_11 : f32 to vector<8x128xf32>
    %14 = arith.maximumf %12, %13 : vector<8x128xf32>
    %c0_12 = arith.constant 0 : index
    %c0_13 = arith.constant 0 : index
    %15 = vector.load %arg6[%c0_12, %c0_13] : memref<8x128xf32, #tpu.memory_space<vmem>>, vector<8x128xf32>
    tpu.vector_store %arg6[%c0_12, %c0_13], %14 {strides = array<i32>} : memref<8x128xf32, #tpu.memory_space<vmem>>, vector<8x128xf32>,
    return
  }
  func.func @transform_0(%arg0: i32) -> (i32, i32) {
    %c0_i32 = arith.constant 0 : i32
    %c0_i32_0 = arith.constant 0 : i32
    return %arg0, %c0_i32 : i32, i32
  }
  func.func @transform_1(%arg0: i32) -> (i32, i32) {
    %c0_i32 = arith.constant 0 : i32
    %c0_i32_0 = arith.constant 0 : i32
    %c0_i32_1 = arith.constant 0 : i32
    return %c0_i32, %c0_i32_0 : i32, i32
  }
  func.func @transform_2(%arg0: i32) -> (i32, i32) {
    %c0_i32 = arith.constant 0 : i32
    %c0_i32_0 = arith.constant 0 : i32
    %c0_i32_1 = arith.constant 0 : i32
    return %c0_i32, %c0_i32_0 : i32, i32
  }
  func.func @transform_3(%arg0: i32) -> (i32, i32) {
    %c0_i32 = arith.constant 0 : i32
    %c0_i32_0 = arith.constant 0 : i32
    %c0_i32_1 = arith.constant 0 : i32
    return %c0_i32, %c0_i32_0 : i32, i32
  }
  func.func @transform_4(%arg0: i32) -> (i32, i32) {
    %c0_i32 = arith.constant 0 : i32
    %c0_i32_0 = arith.constant 0 : i32
    %c0_i32_1 = arith.constant 0 : i32
    return %c0_i32, %c0_i32_0 : i32, i32
  }
  func.func @transform_5(%arg0: i32) -> (i32, i32) {
    %c0_i32 = arith.constant 0 : i32
    %c0_i32_0 = arith.constant 0 : i32
    return %arg0, %c0_i32 : i32, i32
  }
}

</mosaic_0001>

<bundles_post_ra>
// kernel: zones_env_model_forward.1
= control target key start
LH: loop header
LB: loop body
LE: loop exit
PB: predicated region body
PF: predicated region fallthrough
CT: control target
= control target key end

     0   :  { %vm43_vm0 = vcmask 523264   ;;  %s360_s1 = inlined_call_operand.vmem [shape: f32[64,256], index: 1, kind: input, shape index: {}]   ;;  %s361_s3 = inlined_call_operand.vmem [shape: f32[256,128], index: 3, kind: input, shape index: {}]   ;;  %s362_s0 = inlined_call_operand.vmem [shape: f32[8,64], index: 0, kind: input, shape index: {}]   ;;  %s363_s4 = inlined_call_operand.vmem [shape: f32[1,128], index: 4, kind: input, shape index: {}]   ;;  %s364_s2 = inlined_call_operand.vmem [shape: f32[1,256], index: 2, kind: input, shape index: {}]   ;;  %s365_s5 = inlined_call_operand.vmem [shape: f32[8,128], index: 5, kind: output, shape index: {}]  }
   0x1   :  { %v35_v0 = vld [vmem:[%s360_s1 + $0x70] sm:$0xff]  ;;  %v33_v1 = vld [vmem:[%s360_s1 + $0x60] sm:$0xff]  ;;  %v36_v2 = vld [vmem:[%s360_s1 + $0x78] sm:$0xff] }
   0x2   :  { %55 = vmatpush.msra.mxu0 %v35_v0  ;;  %75 = vmatpush.msra.mxu1 %v36_v2  ;;  %v34_v3 = vld [vmem:[%s360_s1 + $0x68] sm:$0xff]  ;;  %v31_v4 = vld [vmem:[%s360_s1 + $0x50] sm:$0xff]  ;;  %v32_v5 = vld [vmem:[%s360_s1 + $0x58] sm:$0xff] }
   0x3   :  { %v29_v6 = vld [vmem:[%s360_s1 + $0x40] sm:$0xff]  ;;  %v30_v7 = vld [vmem:[%s360_s1 + $0x48] sm:$0xff]  ;;  %v27_v8 = vld [vmem:[%s360_s1 + $0x30] sm:$0xff] }
   0x4   :  { %56 = vmatpush.msra.mxu0 %v33_v1  ;;  %76 = vmatpush.msra.mxu1 %v34_v3  ;;  %v104_v9 = vld [vmem:[%s361_s3 + $0x78] sm:$0xff]  ;;  %v103_v11 = vld [vmem:[%s361_s3 + $0x70] sm:$0xff]  ;;  %v102_v13 = vld [vmem:[%s361_s3 + $0x68] sm:$0xff] }
   0x5   :  { %v28_v10 = vld [vmem:[%s360_s1 + $0x38] sm:$0xff]  ;;  %125 = vmatpush.msra.mxu2 %v104_v9  ;;  %v119_v14 = vld [vmem:[%s361_s3 + $0xf0] sm:$0xff]  ;;  %v25_v15 = vld [vmem:[%s360_s1 + $0x20] sm:$0xff] }
   0x6   :  { %57 = vmatpush.msra.mxu0 %v31_v4  ;;  %77 = vmatpush.msra.mxu1 %v32_v5  ;;  %v120_v12 = vld [vmem:[%s361_s3 + $0xf8] sm:$0xff]  ;;  %v26_v16 = vld [vmem:[%s360_s1 + $0x28] sm:$0xff]  ;;  %v101_v17 = vld [vmem:[%s361_s3 + $0x60] sm:$0xff] }
   0x7   :  { %126 = vmatpush.msra.mxu2 %v103_v11  ;;  %145 = vmatpush.msra.mxu3 %v120_v12  ;;  %v118_v18 = vld [vmem:[%s361_s3 + $0xe8] sm:$0xff]  ;;  %v23_v19 = vld [vmem:[%s360_s1 + $0x10] sm:$0xff]  ;;  %v24_v20 = vld [vmem:[%s360_s1 + $0x18] sm:$0xff] }
   0x8   :  { %58 = vmatpush.msra.mxu0 %v29_v6  ;;  %78 = vmatpush.msra.mxu1 %v30_v7  ;;  %v100_v21 = vld [vmem:[%s361_s3 + $0x58] sm:$0xff]  ;;  %v117_v22 = vld [vmem:[%s361_s3 + $0xe0] sm:$0xff]  ;;  %v22_v24 = vld [vmem:[%s360_s1 + $0x8] sm:$0xff] }
   0x9   :  { %127 = vmatpush.msra.mxu2 %v102_v13  ;;  %146 = vmatpush.msra.mxu3 %v119_v14  ;;  %v21_v23 = vld [vmem:[%s360_s1] sm:$0xff]  ;;  %v99_v26 = vld [vmem:[%s361_s3 + $0x50] sm:$0xff]  ;;  %v116_v27 = vld [vmem:[%s361_s3 + $0xd8] sm:$0xff] }
   0xa   :  { %59 = vmatpush.msra.mxu0 %v27_v8  ;;  %79 = vmatpush.msra.mxu1 %v28_v10  ;;  %v20_v25 = vld [vmem:[%s362_s0] sm:$0xff]  ;;  %v98_v28 = vld [vmem:[%s361_s3 + $0x48] sm:$0xff]  ;;  %v115_v29 = vld [vmem:[%s361_s3 + $0xd0] sm:$0xff] }
   0xb   :  { %128 = vmatpush.msra.mxu2 %v101_v17  ;;  %147 = vmatpush.msra.mxu3 %v118_v18  ;;  %v97_v30 = vld [vmem:[%s361_s3 + $0x40] sm:$0xff]  ;;  %v114_v31 = vld [vmem:[%s361_s3 + $0xc8] sm:$0xff]  ;;  %v96_v32 = vld [vmem:[%s361_s3 + $0x38] sm:$0xff] }
   0xc   :  { %60 = vmatpush.msra.mxu0 %v25_v15  ;;  %80 = vmatpush.msra.mxu1 %v26_v16  ;;  %v113_v33 = vld [vmem:[%s361_s3 + $0xc0] sm:$0xff]  ;;  %v95_v34 = vld [vmem:[%s361_s3 + $0x30] sm:$0xff]  ;;  %v112_v35 = vld [vmem:[%s361_s3 + $0xb8] sm:$0xff] }
   0xd   :  { %129 = vmatpush.msra.mxu2 %v100_v21  ;;  %148 = vmatpush.msra.mxu3 %v117_v22  ;;  %v94_v36 = vld [vmem:[%s361_s3 + $0x28] sm:$0xff]  ;;  %v111_v37 = vld [vmem:[%s361_s3 + $0xb0] sm:$0xff]  ;;  %v93_v38 = vld [vmem:[%s361_s3 + $0x20] sm:$0xff] }
   0xe   :  { %61 = vmatpush.msra.mxu0 %v23_v19  ;;  %81 = vmatpush.msra.mxu1 %v24_v20  ;;  %v110_v39 = vld [vmem:[%s361_s3 + $0xa8] sm:$0xff]  ;;  %v92_v40 = vld [vmem:[%s361_s3 + $0x18] sm:$0xff]  ;;  %v109_v41 = vld [vmem:[%s361_s3 + $0xa0] sm:$0xff] }
   0xf   :  { %130 = vmatpush.msra.mxu2 %v99_v26  ;;  %149 = vmatpush.msra.mxu3 %v116_v27  ;;  %v91_v42 = vld [vmem:[%s361_s3 + $0x10] sm:$0xff]  ;;  %v108_v43 = vld [vmem:[%s361_s3 + $0x98] sm:$0xff]  ;;  %v90_v44 = vld [vmem:[%s361_s3 + $0x8] sm:$0xff] }
  0x10   :  { %62 = vmatpush.msra.mxu0 %v21_v23  ;;  %82 = vmatpush.msra.mxu1 %v22_v24  ;;  %v107_v45 = vld [vmem:[%s361_s3 + $0x90] sm:$0xff]  ;;  %v89_v46 = vld [vmem:[%s361_s3] sm:$0xff]  ;;  %v106_v47 = vld [vmem:[%s361_s3 + $0x88] sm:$0xff] }
  0x11   :  { %171 = vmatmul.msk.f32.vlgmr.msra.gmra.mxu0 %vm43_vm0, %v20_v25  ;;  %172 = vmatmul.msk.f32.vlgmr.msra.gmra.mxu1 %vm43_vm0, %v20_v25  ;;  %v105_v48 = vld [vmem:[%s361_s3 + $0x80] sm:$0xff] }
  0x12   :  { %131 = vmatpush.msra.mxu2 %v98_v28  ;;  %150 = vmatpush.msra.mxu3 %v115_v29  ;;  %v37_v49 = vld [vmem:[%s364_s2] sm:$0x3] }
  0x13   :  { %v39_v50 = vperm.slane %v37_v49, 0  ;;  %v40_v51 = vperm.slane %v37_v49, 1  ;;  %v173_v58 = vld [vmem:[%s363_s4] ss:$0 sm:$0xff] }
  0x14   :  { %132 = vmatpush.msra.mxu2 %v97_v30  ;;  %151 = vmatpush.msra.mxu3 %v114_v31 }
  0x16   :  { %133 = vmatpush.msra.mxu2 %v96_v32  ;;  %152 = vmatpush.msra.mxu3 %v113_v33 }
  0x18   :  { %134 = vmatpush.msra.mxu2 %v95_v34  ;;  %153 = vmatpush.msra.mxu3 %v112_v35 }
  0x1a   :  { %135 = vmatpush.msra.mxu2 %v94_v36  ;;  %154 = vmatpush.msra.mxu3 %v111_v37 }
  0x1c   :  { %136 = vmatpush.msra.mxu2 %v93_v38  ;;  %155 = vmatpush.msra.mxu3 %v110_v39 }
  0x1e   :  { %137 = vmatpush.msra.mxu2 %v92_v40  ;;  %156 = vmatpush.msra.mxu3 %v109_v41 }
  0x20   :  { %138 = vmatpush.msra.mxu2 %v91_v42  ;;  %157 = vmatpush.msra.mxu3 %v108_v43 }
  0x22   :  { %139 = vmatpush.msra.mxu2 %v90_v44  ;;  %158 = vmatpush.msra.mxu3 %v107_v45 }
  0x24   :  { %140 = vmatpush.msra.mxu2 %v89_v46  ;;  %159 = vmatpush.msra.mxu3 %v106_v47 }
  0x26   :  { %160 = vmatpush.msra.mxu3 %v105_v48 }
  0x8e   :  { %v64_v52 = vpop.f32.mrf.mxu0  ;;  %v84_v53 = vpop.f32.mrf.mxu1 }
  0x8f   :  { %v65_v54 = vadd.f32 %v64_v52, %v39_v50  ;;  %v85_v55 = vadd.f32 %v84_v53, %v40_v51 }
  0x91   :  { %v87_v56 = vmax.f32 %v65_v54, 0.0  ;;  %v88_v57 = vmax.f32 %v85_v55, 0.0 }
  0x93   :  { %141 = vmatmul.f32.vlgmr.msra.gmra.mxu2 %v87_v56  ;;  %161 = vmatmul.f32.vlgmr.msra.gmra.mxu3 %v88_v57 }
 0x116   :  { %v142_v59 = vpop.f32.mrf.mxu2  ;;  %v162_v60 = vpop.f32.mrf.mxu3 }
 0x117   :  { %v143_v61 = vadd.f32 %v173_v58, %v142_v59 }
 0x119   :  { %v163_v62 = vadd.f32 %v162_v60, %v143_v61 }
 0x11b   :  { %v165_v63 = vmax.f32 %v163_v62, 0.0 }
 0x11d   :  { %166 = vst [vmem:[%s365_s5] sm:$0xff] %v165_v63 }

</bundles_post_ra>
